<compile_context>
chip_gen: v6e
topology: v6e:2x2x1
jax: 0.10.0
libtpu: 0.0.40
codegen_flags: <defaults>
</compile_context>

<pallas_src>
import functools

import jax
import jax.numpy as jnp
from jax import lax
from jax.experimental import pallas as pl
from jax.experimental.pallas import tpu as pltpu


VMEM_SPEC = pl.BlockSpec(memory_space=pltpu.MemorySpace.VMEM)


def _vmem_limit_bytes():
    """Generation-aware scoped-VMEM limit (~7/8 of physical capacity)."""
    try:
        cap = getattr(pltpu.get_tpu_info(), "vmem_capacity_bytes", None)
        if cap:
            return int(cap) * 7 // 8        # 112 MiB on v5e/v6e, 56 MiB on v7x
    except Exception:
        pass
    return 56 * 1024 * 1024


_VMEM_LIMIT = _vmem_limit_bytes()


def _pick_tile(n_pad, preferences):
    """Largest preferred tile that divides n_pad (n_pad is a multiple of 128)."""
    for t in preferences:
        if n_pad % t == 0:
            return t
    return n_pad


# --------------------------------------------------------------------------
# GAT layer 1, stage 1: per-node projection for BOTH graphs.
#   Wh = x @ W  (bf16 out),   e = x @ (W @ a)  ([e_src | e_dst], f32)
# --------------------------------------------------------------------------
def _gat_proj_kernel(x_ref, w_ref, wa_ref, wh_ref, e_ref):
    w = w_ref[...]
    wa = wa_ref[...]
    for g in range(2):                                   # static unroll over graphs
        xg = x_ref[g]                                    # (tq, fin) bf16
        wh = jnp.dot(xg, w, preferred_element_type=jnp.float32)
        wh_ref[g] = wh.astype(wh_ref.dtype)              # bf16 resident operand
        e_ref[g] = jnp.dot(xg, wa, preferred_element_type=jnp.float32)


def gat_projection(x_bf, w_bf, wa_bf, *, tq):
    g2, n_pad, fin = x_bf.shape
    fout = w_bf.shape[1]
    return pl.pallas_call(
        _gat_proj_kernel,
        out_shape=(jax.ShapeDtypeStruct((g2, n_pad, fout), jnp.bfloat16),
                   jax.ShapeDtypeStruct((g2, n_pad, 2), jnp.float32)),
        grid=(n_pad // tq,),
        in_specs=[pl.BlockSpec((g2, tq, fin), lambda i: (0, i, 0)),
                  pl.BlockSpec((fin, fout), lambda i: (0, 0)),
                  pl.BlockSpec((fin, 2), lambda i: (0, 0))],
        out_specs=(pl.BlockSpec((g2, tq, fout), lambda i: (0, i, 0)),
                   pl.BlockSpec((g2, tq, 2), lambda i: (0, i, 0))),
        compiler_params=pltpu.CompilerParams(
            dimension_semantics=("parallel",),
            vmem_limit_bytes=_VMEM_LIMIT),
    )(x_bf, w_bf, wa_bf)


# --------------------------------------------------------------------------
# Flash-style masked-softmax attention for BOTH graphs, k axis last/arbitrary.
# Wh is a full-extent VMEM-resident block; the adj mask arrives as an
# additive bf16 bias tile (0 / -9e15).  When `fuse_next`, the finalize step
# directly emits the next layer's projection (Wh_next, e_next).
# --------------------------------------------------------------------------
def _gat_attn_kernel(*refs, tk, apply_elu, fuse_next):
    if fuse_next:
        (wh_ref, esrc_ref, edst_ref, bias_ref, wn_ref, wan_ref,
         whn_ref, en_ref, m_sc, l_sc, acc_sc) = refs
    else:
        (wh_ref, esrc_ref, edst_ref, bias_ref,
         out_ref, m_sc, l_sc, acc_sc) = refs

    j = pl.program_id(1)

    @pl.when(j == 0)
    def _():
        m_sc[...] = jnp.full(m_sc.shape, -jnp.inf, dtype=jnp.float32)
        l_sc[...] = jnp.zeros_like(l_sc)
        acc_sc[...] = jnp.zeros_like(acc_sc)

    joff = pl.multiple_of(j * tk, tk)
    wh_k = wh_ref[:, pl.ds(joff, tk), :]                 # (2, tk, fout) bf16, VMEM slice

    # (2,tq,1)+(2,1,tk) broadcast add on the VPU; LeakyReLU as a single max.
    s = esrc_ref[...] + edst_ref[...]
    s = jnp.maximum(s, 0.2 * s)
    s = s + bias_ref[...].astype(jnp.float32)            # additive mask (0 / -9e15)

    m_prev = m_sc[...]
    m_new = jnp.maximum(m_prev, jnp.max(s, axis=-1, keepdims=True))
    corr = jnp.exp(m_prev - m_new)
    p = jnp.exp(s - m_new)
    l_sc[...] = corr * l_sc[...] + jnp.sum(p, axis=-1, keepdims=True)
    acc_sc[...] = corr * acc_sc[...] + jnp.einsum(
        "gqk,gkd->gqd", p.astype(jnp.bfloat16), wh_k,
        preferred_element_type=jnp.float32)
    m_sc[...] = m_new

    @pl.when(j == pl.num_programs(1) - 1)
    def _():
        h = acc_sc[...] * pl.reciprocal(l_sc[...], approx=True)
        if apply_elu:
            # clamp the dead branch so exp() never overflows
            h = jnp.where(h > 0.0, h, jnp.exp(jnp.minimum(h, 0.0)) - 1.0)
        if fuse_next:
            hb = h.astype(jnp.bfloat16)
            wn = wn_ref[...]
            wan = wan_ref[...]
            for g in range(2):
                whn = jnp.dot(hb[g], wn, preferred_element_type=jnp.float32)
                whn_ref[g] = whn.astype(whn_ref.dtype)
                en_ref[g] = jnp.dot(hb[g], wan, preferred_element_type=jnp.float32)
        else:
            out_ref[...] = h.astype(out_ref.dtype)


def gat_attention(wh, e, bias, *, tq, tk, apply_elu, w_next=None, wa_next=None):
    g2, n_pad, fout = wh.shape
    e_src = e[:, :, 0:1]                                  # (2, N, 1)
    e_dst = e[:, :, 1:2].reshape(g2, 1, n_pad)            # (2, 1, N)
    fuse_next = w_next is not None

    in_specs = [
        pl.BlockSpec((g2, n_pad, fout), lambda i, j: (0, 0, 0)),   # Wh: VMEM resident
        pl.BlockSpec((g2, tq, 1), lambda i, j: (0, i, 0)),         # e_src (q tile)
        pl.BlockSpec((g2, 1, tk), lambda i, j: (0, 0, j)),         # e_dst (k tile)
        pl.BlockSpec((tq, tk), lambda i, j: (i, j)),               # additive bias tile
    ]
    args = [wh, e_src, e_dst, bias]
    if fuse_next:
        fnext = w_next.shape[1]
        in_specs += [pl.BlockSpec(w_next.shape, lambda i, j: (0, 0)),
                     pl.BlockSpec(wa_next.shape, lambda i, j: (0, 0))]
        args += [w_next, wa_next]
        out_shape = (jax.ShapeDtypeStruct((g2, n_pad, fnext), jnp.bfloat16),
                     jax.ShapeDtypeStruct((g2, n_pad, 2), jnp.float32))
        out_specs = (pl.BlockSpec((g2, tq, fnext), lambda i, j: (0, i, 0)),
                     pl.BlockSpec((g2, tq, 2), lambda i, j: (0, i, 0)))
    else:
        out_shape = jax.ShapeDtypeStruct((g2, n_pad, fout), jnp.float32)
        out_specs = pl.BlockSpec((g2, tq, fout), lambda i, j: (0, i, 0))

    return pl.pallas_call(
        functools.partial(_gat_attn_kernel, tk=tk, apply_elu=apply_elu,
                          fuse_next=fuse_next),
        out_shape=out_shape,
        grid=(n_pad // tq, n_pad // tk),
        in_specs=in_specs,
        out_specs=out_specs,
        scratch_shapes=[pltpu.VMEM((g2, tq, 1), jnp.float32),     # running max m
                        pltpu.VMEM((g2, tq, 1), jnp.float32),     # running denom l
                        pltpu.VMEM((g2, tq, fout), jnp.float32)], # running numerator
        compiler_params=pltpu.CompilerParams(
            dimension_semantics=("parallel", "arbitrary"),
            vmem_limit_bytes=_VMEM_LIMIT),
    )(*args)


# --------------------------------------------------------------------------
# Fused "head": AvgReadout + Bilinear Discriminator + Clusterator (soft
# k-means on the unit sphere, (K, N) lane-dense loop) + Discriminator_cluster.
# Both outputs are lane-dense (2, N) rows.
# --------------------------------------------------------------------------
def _head_kernel(h_ref, w_ref, b_ref, mu0_ref, ret_ref, ret2_ref, mu_sc,
                 *, temp, num_iter):
    h1 = h_ref[0]                     # (N, nh) positive graph
    h2 = h_ref[1]                     # (N, nh) corrupted graph
    b = b_ref[...]                    # (1, 1)

    # ---- Discriminator: c = sigmoid(mean over nodes); score = h W c^T + b ----
    c = jax.nn.sigmoid(jnp.mean(h1, axis=0, keepdims=True))          # (1, nh)
    wc_row = lax.dot_general(c, w_ref[...], (((1,), (1,)), ((), ())),
                             preferred_element_type=jnp.float32)     # (1, nh) = c @ W^T
    ret_ref[0:1, :] = lax.dot_general(wc_row, h1, (((1,), (1,)), ((), ())),
                                      preferred_element_type=jnp.float32) + b
    ret_ref[1:2, :] = lax.dot_general(wc_row, h2, (((1,), (1,)), ((), ())),
                                      preferred_element_type=jnp.float32) + b

    # ---- Clusterator: soft k-means on the unit sphere ----
    sumsq = jnp.sum(h1 * h1, axis=1, keepdims=True)
    data = h1 * pl.reciprocal(jnp.sqrt(sumsq) + 1e-6, approx=True)   # (N, nh)
    mu_sc[...] = mu0_ref[...]                                        # (K, nh)

    @pl.loop(0, num_iter)
    def _(_it):
        mu = mu_sc[...]
        dist_t = lax.dot_general(mu, data, (((1,), (1,)), ((), ())),
                                 preferred_element_type=jnp.float32)  # (K, N) lane-dense
        logits = temp * dist_t
        logits = logits - jnp.max(logits, axis=0, keepdims=True)
        p = jnp.exp(logits)
        r_t = p * pl.reciprocal(jnp.sum(p, axis=0, keepdims=True), approx=True)
        cden = jnp.sum(r_t, axis=1, keepdims=True) + 1e-8              # (K, 1)
        r_norm = r_t * pl.reciprocal(cden, approx=True)
        mu_sc[...] = jnp.dot(r_norm, data, preferred_element_type=jnp.float32)

    mu = mu_sc[...]
    # Final responsibilities S (single pass, (N, K) layout) and c2 = sigmoid(S @ Z)
    dist = lax.dot_general(data, mu, (((1,), (1,)), ((), ())),
                           preferred_element_type=jnp.float32)        # (N, K)
    logits = temp * dist
    logits = logits - jnp.max(logits, axis=1, keepdims=True)
    p = jnp.exp(logits)
    s_resp = p * pl.reciprocal(jnp.sum(p, axis=1, keepdims=True), approx=True)
    c2 = jax.nn.sigmoid(jnp.dot(s_resp, mu, preferred_element_type=jnp.float32))  # (N, nh)

    # ---- Discriminator_cluster: per-node <h, c2> as lane-dense (1, N) rows ----
    ones_row = jnp.ones((1, h1.shape[1]), dtype=jnp.float32)
    ret2_ref[0:1, :] = lax.dot_general(ones_row, h1 * c2, (((1,), (1,)), ((), ())),
                                       preferred_element_type=jnp.float32)
    ret2_ref[1:2, :] = lax.dot_general(ones_row, h2 * c2, (((1,), (1,)), ((), ())),
                                       preferred_element_type=jnp.float32)


def head_call(h_both, w, b, mu_init, cluster_temp, num_iter):
    _, n, nh = h_both.shape
    k = mu_init.shape[0]
    return pl.pallas_call(
        functools.partial(_head_kernel, temp=float(cluster_temp),
                          num_iter=int(num_iter)),
        out_shape=(jax.ShapeDtypeStruct((2, n), jnp.float32),
                   jax.ShapeDtypeStruct((2, n), jnp.float32)),
        in_specs=[VMEM_SPEC, VMEM_SPEC, VMEM_SPEC, VMEM_SPEC],
        out_specs=(VMEM_SPEC, VMEM_SPEC),
        scratch_shapes=[pltpu.VMEM((k, nh), jnp.float32)],
        compiler_params=pltpu.CompilerParams(vmem_limit_bytes=_VMEM_LIMIT),
    )(h_both, w, b, mu_init)


# --------------------------------------------------------------------------
# GIC_GAT.forward
# --------------------------------------------------------------------------
def gic_gat_forward(seq1, seq2, adj, params, cluster_temp, kmeans_iters=10):
    n = seq1.shape[1]
    x = jnp.concatenate([seq1, seq2], axis=0)             # (2, N, n_in)

    # Pad nodes to a multiple of 128; padded rows get zero features and an
    # isolated self-loop so their masked softmax stays well-defined.
    n_pad = ((n + 127) // 128) * 128
    tq = _pick_tile(n_pad, (256, 128))
    tk = _pick_tile(n_pad, (512, 256, 128))
    if n_pad != n:
        x = jnp.pad(x, ((0, 0), (0, n_pad - n), (0, 0)))
    adj_p = jnp.eye(n_pad, dtype=jnp.float32)
    adj_p = adj_p.at[:n, :n].set(adj)
    bias = jnp.where(adj_p > 0.0, 0.0, -9e15).astype(jnp.bfloat16)   # additive mask

    # bf16 MXU operands; e = x @ (W @ a) with Wa precomputed at trace time.
    x_bf = x.astype(jnp.bfloat16)
    w1 = params["w1"].astype(jnp.bfloat16)
    wa1 = (params["w1"] @ params["a1"]).astype(jnp.bfloat16)
    w2 = params["w2"].astype(jnp.bfloat16)
    wa2 = (params["w2"] @ params["a2"]).astype(jnp.bfloat16)

    # Layer 1 projection -> layer 1 attention (+fused layer-2 projection)
    wh1, e1 = gat_projection(x_bf, w1, wa1, tq=tq)
    wh2, e2 = gat_attention(wh1, e1, bias, tq=tq, tk=tk, apply_elu=True,
                            w_next=w2, wa_next=wa2)
    # Layer 2 attention
    h_pad = gat_attention(wh2, e2, bias, tq=tq, tk=tk, apply_elu=False)
    h = h_pad[:, :n, :]                                    # drop padded nodes

    ret_pair, ret2_pair = head_call(h, params["disc_w"], params["disc_b"],
                                    params["mu_init"], cluster_temp,
                                    num_iter=kmeans_iters + 1)

    ret = ret_pair.reshape(1, 2 * n)    # disc(c, h_1, h_2)
    ret2 = ret2_pair.reshape(1, 2 * n)  # disc_c(sigmoid(S@Z), ..., h_1, h_2, S)
    return ret, ret2


# --------------------------------------------------------------------------
# Deterministic parameter initialization
# --------------------------------------------------------------------------
def init_params(key, n_in, n_hidden, n_h, num_clusters):
    ks = jax.random.split(key, 6)

    def xavier(k, shape):
        limit = (6.0 / (shape[0] + shape[1])) ** 0.5
        return jax.random.uniform(k, shape, jnp.float32, -limit, limit)

    return {
        "w1": xavier(ks[0], (n_in, n_hidden)),        # GAT layer 1 weight
        "a1": xavier(ks[1], (n_hidden, 2)),           # GAT layer 1 attention [a_src|a_dst]
        "w2": xavier(ks[2], (n_hidden, n_h)),         # GAT layer 2 weight
        "a2": xavier(ks[3], (n_h, 2)),                # GAT layer 2 attention
        "disc_w": xavier(ks[4], (n_h, n_h)),          # Bilinear(n_h, n_h, 1) weight
        "disc_b": jnp.zeros((1, 1), jnp.float32),     # Bilinear bias (zero init)
        "mu_init": jax.random.uniform(ks[5], (num_clusters, n_h), jnp.float32),
    }


if __name__ == "__main__":
    key = jax.random.PRNGKey(0)
    N, n_in, n_hidden, n_h, K = 16, 32, 512, 32, 4     # n_nb=16, net_params=[32,512,32]
    cluster_temp = 100.0

    k_feat, k_perm, k_adj, k_par = jax.random.split(key, 4)

    seq1 = jax.random.normal(k_feat, (1, N, n_in), jnp.float32)
    perm = jax.random.permutation(k_perm, N)
    seq2 = seq1[:, perm, :]                            # corrupted (shuffled) features

    adj = (jax.random.uniform(k_adj, (N, N)) < 0.3).astype(jnp.float32)
    adj = jnp.maximum(adj, adj.T)
    adj = jnp.maximum(adj, jnp.eye(N, dtype=jnp.float32))   # add self-loops

    params = init_params(k_par, n_in, n_hidden, n_h, K)

    ret, ret2 = gic_gat_forward(seq1, seq2, adj, params, cluster_temp)
    jax.block_until_ready((ret, ret2))

    assert ret.shape == (1, 2 * N), ret.shape
    assert ret2.shape == (1, 2 * N), ret2.shape
    assert bool(jnp.all(jnp.isfinite(ret))) and bool(jnp.all(jnp.isfinite(ret2)))
    print("KERNEL_OK")
</pallas_src>

<mosaic_0001>
module attributes {stable_mosaic.version = 11 : i64} {
  func.func @_gat_proj_kernel(%arg0: i32, %arg1: memref<2x128x32xbf16, #tpu.memory_space<vmem>>, %arg2: memref<32x512xbf16, #tpu.memory_space<vmem>>, %arg3: memref<32x2xbf16, #tpu.memory_space<vmem>>, %arg4: memref<2x128x512xbf16, #tpu.memory_space<vmem>>, %arg5: memref<2x128x2xf32, #tpu.memory_space<vmem>>) attributes {dimension_semantics = [#tpu.dimension_semantics<parallel>], iteration_bounds = array<i64: 1>, scalar_prefetch = 0 : i64, scratch_operands = 0 : i64, tpu.core_type = #tpu.core_type<tc>, window_params = [{transform_indices = @transform_0, window_bounds = array<i64: 2, 128, 32>}, {pipeline_mode = #tpu.pipeline_mode<synchronous>, transform_indices = @transform_1, window_bounds = array<i64: 32, 512>}, {pipeline_mode = #tpu.pipeline_mode<synchronous>, transform_indices = @transform_2, window_bounds = array<i64: 32, 2>}, {transform_indices = @transform_3, window_bounds = array<i64: 2, 128, 512>}, {transform_indices = @transform_4, window_bounds = array<i64: 2, 128, 2>}]} {
    %c0 = arith.constant 0 : index
    %c0_0 = arith.constant 0 : index
    %0 = vector.load %arg2[%c0, %c0_0] : memref<32x512xbf16, #tpu.memory_space<vmem>>, vector<32x512xbf16>
    %c0_1 = arith.constant 0 : index
    %c0_2 = arith.constant 0 : index
    %1 = vector.load %arg3[%c0_1, %c0_2] : memref<32x2xbf16, #tpu.memory_space<vmem>>, vector<32x2xbf16>
    %c0_3 = arith.constant 0 : index
    %c0_4 = arith.constant 0 : index
    %c0_5 = arith.constant 0 : index
    %2 = vector.load %arg1[%c0_3, %c0_4, %c0_5] : memref<2x128x32xbf16, #tpu.memory_space<vmem>>, vector<1x128x32xbf16>
    %3 = vector.shape_cast %2 : vector<1x128x32xbf16> to vector<128x32xbf16>
    %cst = arith.constant dense<0.000000e+00> : vector<128x512xf32>
    %4 = tpu.matmul %3, %0, %cst {dimension_numbers = #tpu.dot_dimension_numbers<[1], [0], [0], [1], [0, 0, 1, 1], [], []>} : vector<128x32xbf16>, vector<32x512xbf16>, vector<128x512xf32> -> vector<128x512xf32>
    %5 = arith.truncf %4 : vector<128x512xf32> to vector<128x512xbf16>
    %c0_6 = arith.constant 0 : index
    %c0_7 = arith.constant 0 : index
    %c0_8 = arith.constant 0 : index
    %6 = vector.load %arg4[%c0_6, %c0_7, %c0_8] : memref<2x128x512xbf16, #tpu.memory_space<vmem>>, vector<1x128x512xbf16>
    %7 = vector.shape_cast %6 : vector<1x128x512xbf16> to vector<128x512xbf16>
    %8 = vector.shape_cast %5 : vector<128x512xbf16> to vector<1x128x512xbf16>
    tpu.vector_store %arg4[%c0_6, %c0_7, %c0_8], %8 {strides = array<i32>} : memref<2x128x512xbf16, #tpu.memory_space<vmem>>, vector<1x128x512xbf16>,
    %cst_9 = arith.constant dense<0.000000e+00> : vector<128x2xf32>
    %9 = tpu.matmul %3, %1, %cst_9 {dimension_numbers = #tpu.dot_dimension_numbers<[1], [0], [0], [1], [0, 0, 1, 1], [], []>} : vector<128x32xbf16>, vector<32x2xbf16>, vector<128x2xf32> -> vector<128x2xf32>
    %c0_10 = arith.constant 0 : index
    %c0_11 = arith.constant 0 : index
    %c0_12 = arith.constant 0 : index
    %10 = vector.load %arg5[%c0_10, %c0_11, %c0_12] : memref<2x128x2xf32, #tpu.memory_space<vmem>>, vector<1x128x2xf32>
    %11 = vector.shape_cast %10 : vector<1x128x2xf32> to vector<128x2xf32>
    %12 = vector.shape_cast %9 : vector<128x2xf32> to vector<1x128x2xf32>
    tpu.vector_store %arg5[%c0_10, %c0_11, %c0_12], %12 {strides = array<i32>} : memref<2x128x2xf32, #tpu.memory_space<vmem>>, vector<1x128x2xf32>,
    %c1 = arith.constant 1 : index
    %c0_13 = arith.constant 0 : index
    %c0_14 = arith.constant 0 : index
    %13 = vector.load %arg1[%c1, %c0_13, %c0_14] : memref<2x128x32xbf16, #tpu.memory_space<vmem>>, vector<1x128x32xbf16>
    %14 = vector.shape_cast %13 : vector<1x128x32xbf16> to vector<128x32xbf16>
    %cst_15 = arith.constant dense<0.000000e+00> : vector<128x512xf32>
    %15 = tpu.matmul %14, %0, %cst_15 {dimension_numbers = #tpu.dot_dimension_numbers<[1], [0], [0], [1], [0, 0, 1, 1], [], []>} : vector<128x32xbf16>, vector<32x512xbf16>, vector<128x512xf32> -> vector<128x512xf32>
    %16 = arith.truncf %15 : vector<128x512xf32> to vector<128x512xbf16>
    %c1_16 = arith.constant 1 : index
    %c0_17 = arith.constant 0 : index
    %c0_18 = arith.constant 0 : index
    %17 = vector.load %arg4[%c1_16, %c0_17, %c0_18] : memref<2x128x512xbf16, #tpu.memory_space<vmem>>, vector<1x128x512xbf16>
    %18 = vector.shape_cast %17 : vector<1x128x512xbf16> to vector<128x512xbf16>
    %19 = vector.shape_cast %16 : vector<128x512xbf16> to vector<1x128x512xbf16>
    tpu.vector_store %arg4[%c1_16, %c0_17, %c0_18], %19 {strides = array<i32>} : memref<2x128x512xbf16, #tpu.memory_space<vmem>>, vector<1x128x512xbf16>,
    %cst_19 = arith.constant dense<0.000000e+00> : vector<128x2xf32>
    %20 = tpu.matmul %14, %1, %cst_19 {dimension_numbers = #tpu.dot_dimension_numbers<[1], [0], [0], [1], [0, 0, 1, 1], [], []>} : vector<128x32xbf16>, vector<32x2xbf16>, vector<128x2xf32> -> vector<128x2xf32>
    %c1_20 = arith.constant 1 : index
    %c0_21 = arith.constant 0 : index
    %c0_22 = arith.constant 0 : index
    %21 = vector.load %arg5[%c1_20, %c0_21, %c0_22] : memref<2x128x2xf32, #tpu.memory_space<vmem>>, vector<1x128x2xf32>
    %22 = vector.shape_cast %21 : vector<1x128x2xf32> to vector<128x2xf32>
    %23 = vector.shape_cast %20 : vector<128x2xf32> to vector<1x128x2xf32>
    tpu.vector_store %arg5[%c1_20, %c0_21, %c0_22], %23 {strides = array<i32>} : memref<2x128x2xf32, #tpu.memory_space<vmem>>, vector<1x128x2xf32>,
    return
  }
  func.func @transform_0(%arg0: i32) -> (i32, i32, i32) {
    %c0_i32 = arith.constant 0 : i32
    %c0_i32_0 = arith.constant 0 : i32
    %c0_i32_1 = arith.constant 0 : i32
    return %c0_i32, %arg0, %c0_i32_0 : i32, i32, i32
  }
  func.func @transform_1(%arg0: i32) -> (i32, i32) {
    %c0_i32 = arith.constant 0 : i32
    %c0_i32_0 = arith.constant 0 : i32
    %c0_i32_1 = arith.constant 0 : i32
    return %c0_i32, %c0_i32_0 : i32, i32
  }
  func.func @transform_2(%arg0: i32) -> (i32, i32) {
    %c0_i32 = arith.constant 0 : i32
    %c0_i32_0 = arith.constant 0 : i32
    %c0_i32_1 = arith.constant 0 : i32
    return %c0_i32, %c0_i32_0 : i32, i32
  }
  func.func @transform_3(%arg0: i32) -> (i32, i32, i32) {
    %c0_i32 = arith.constant 0 : i32
    %c0_i32_0 = arith.constant 0 : i32
    %c0_i32_1 = arith.constant 0 : i32
    return %c0_i32, %arg0, %c0_i32_0 : i32, i32, i32
  }
  func.func @transform_4(%arg0: i32) -> (i32, i32, i32) {
    %c0_i32 = arith.constant 0 : i32
    %c0_i32_0 = arith.constant 0 : i32
    %c0_i32_1 = arith.constant 0 : i32
    return %c0_i32, %arg0, %c0_i32_0 : i32, i32, i32
  }
}

</mosaic_0001>

<bundles_post_ra>
// kernel: tpu_custom_call.1
= control target key start
LH: loop header
LB: loop body
LE: loop exit
PB: predicated region body
PF: predicated region fallthrough
CT: control target
= control target key end

     0   :  { %v1743_v2 = vmov 0   ;;  %vm126_vm0 = vcmask 261120   ;;  %s2073_s0 = inlined_call_operand.vmem [shape: bf16[2,128,32], index: 0, kind: input, shape index: {}]   ;;  %s2074_s1 = inlined_call_operand.vmem [shape: bf16[32,512], index: 1, kind: input, shape index: {}]   ;;  %s2075_s2 = inlined_call_operand.vmem [shape: bf16[32,2], index: 2, kind: input, shape index: {}]   ;;  %s2076_s3 = inlined_call_operand.hbm [shape: bf16[2,128,512], index: 3, kind: output, shape index: {0}]   ;;  %s2077_s4 = inlined_call_operand.vmem [shape: f32[2,128,2], index: 4, kind: output, shape index: {1}]  }
   0x1   :  { %v1691_v0 = vld [vmem:[%s2074_s1 + $0x24] ss:$16 sps:$4 sm:$0xff]   ;;  %v1693_v1 = vld [vmem:[%s2074_s1 + $0x2c] ss:$16 sps:$4 sm:$0xff]   ;;  %183 = vmatprep.mubr.bf16.mxu0 %v1743_v2  ;;  %296 = vmatprep.mubr.bf16.mxu1 %v1743_v2  ;;  %v1695_v3 = vld [vmem:[%s2074_s1 + $0x20] ss:$16 sps:$4 sm:$0xff]  }
   0x2   :  { %163 = vmatprep.subr.bf16.mxu0 %v1691_v0  ;;  %v1786_v4 = vld [vmem:[%s2074_s1 + $0x28] ss:$16 sps:$4 sm:$0xff]   ;;  %276 = vmatprep.subr.bf16.mxu1 %v1693_v1  ;;  %v1697_v5 = vld [vmem:[%s2074_s1 + $0x4] ss:$16 sps:$4 sm:$0xff]   ;;  %v1795_v6 = vld [vmem:[%s2074_s1 + $0xc] ss:$16 sps:$4 sm:$0xff]  }
   0x3   :  { %164 = vmatpush1.bf16.msra.mxu0 %v1695_v3  ;;  %277 = vmatpush1.bf16.msra.mxu1 %v1786_v4  ;;  %v1701_v7 = vld [vmem:[%s2074_s1] ss:$16 sps:$4 sm:$0xff]   ;;  %v1803_v8 = vld [vmem:[%s2074_s1 + $0x8] ss:$16 sps:$4 sm:$0xff]  }
   0x4   :  { %165 = vmatprep.subr.bf16.mxu0 %v1697_v5  ;;  %278 = vmatprep.subr.bf16.mxu1 %v1795_v6  ;;  %v1703_v9 = vld [vmem:[%s2073_s0] sm:$0xff]   ;;  %v1704_v10 = vld [vmem:[%s2075_s2 + $0x8] sm:$0xff]   ;;  %v1706_v13 = vld [vmem:[%s2073_s0 + $0x10] sm:$0xff]  }
   0x5   :  { %v1709_v11 = vld [vmem:[%s2075_s2] sm:$0xff]   ;;  %v1705_v12 = vld [vmem:[%s2073_s0 + $0x8] sm:$0xff]  }
   0x7   :  { %166 = vmatpush1.bf16.msra.mxu0 %v1701_v7  ;;  %279 = vmatpush1.bf16.msra.mxu1 %v1803_v8 }
   0x8   :  { %1647 = vmatprep.subr.bf16.mxu0 %v1704_v10  ;;  %820 = vmatprep.subr.bf16.mxu1 %v1691_v0 }
   0xa   :  { %1409 = vmatmul.mubr.msk.bf16.vlgmr.msra.gmra.mxu0 %vm126_vm0, %v1703_v9  ;;  %1417 = vmatmul.mubr.msk.bf16.vlgmr.msra.gmra.mxu1 %vm126_vm0, %v1703_v9 }
   0xb   :  { %1648 = vmatpush3.bf16.msra.mxu0 %v1704_v10  ;;  %821 = vmatpush1.bf16.msra.mxu1 %v1695_v3 }
   0xc   :  { %193 = vmatprep.mubr.bf16.mxu0 %v1743_v2  ;;  %306 = vmatprep.mubr.bf16.mxu1 %v1743_v2 }
   0xd   :  { %1649 = vmatprep.subr.bf16.mxu0 %v1709_v11  ;;  %822 = vmatprep.subr.bf16.mxu1 %v1697_v5 }
   0xf   :  { %1650 = vmatpush3.bf16.msra.mxu0 %v1709_v11  ;;  %823 = vmatpush1.bf16.msra.mxu1 %v1701_v7 }
  0x10   :  { %933 = vmatprep.subr.bf16.mxu0 %v1693_v1  ;;  %1667 = vmatprep.subr.bf16.mxu1 %v1704_v10 }
  0x12   :  { %1410 = vmatmul.mubr.msk.bf16.gmra.mxu0 %vm126_vm0, %v1705_v12  ;;  %1418 = vmatmul.mubr.msk.bf16.gmra.mxu1 %vm126_vm0, %v1705_v12 }
  0x13   :  { %203 = vmatprep.mubr.bf16.mxu0 %v1743_v2  ;;  %316 = vmatprep.mubr.bf16.mxu1 %v1743_v2 }
  0x14   :  { %10 = vsyncpa [#allocation3], 0  ;;  %v1707_v14 = vld [vmem:[%s2073_s0 + $0x18] sm:$0xff]   ;;  %v1708_v15 = vld [vmem:[%s2073_s0 + $0x20] sm:$0xff]   ;;  %vm710_vm1 = vcmask 15360   ;;  %s1744_s12 = smov [#allocation2]  }
  0x15   :  { %v1710_v16 = vld [vmem:[%s2073_s0 + $0x28] sm:$0xff]   ;;  %v1711_v17 = vld [vmem:[%s2073_s0 + $0x30] sm:$0xff]   ;;  %v1712_v18 = vld [vmem:[%s2073_s0 + $0x38] sm:$0xff]   ;;  %s1378_s13 = sshll.u32 %s1744_s12, 4  ;;  %s1379_s13 = int_to_ptr.vmem [resolvable:$true] %s1378_s13 }
  0x16   :  { %v1713_v19 = vld [vmem:[%s2073_s0 + $0x40] sm:$0xff]   ;;  %v1714_v20 = vld [vmem:[%s2073_s0 + $0x48] sm:$0xff]   ;;  %v1715_v21 = vld [vmem:[%s2073_s0 + $0x50] sm:$0xff]   ;;  %s1721_s18 = scalar_lea.vmem %s1379_s13, 8192  ;;  %p1726_p1 = scmp.lt.s32.totalorder %s1379_s13, %s1379_s13 }
  0x17   :  { %v1716_v22 = vld [vmem:[%s2073_s0 + $0x58] sm:$0xff]   ;;  %v1717_v23 = vld [vmem:[%s2073_s0 + $0x60] sm:$0xff]   ;;  %v1718_v24 = vld [vmem:[%s2073_s0 + $0x68] sm:$0xff]   ;;  %p1722_p0 = scmp.ne.s32.totalorder %s1379_s13, %s1721_s18  ;;  %p1727_p2 = scmp.lt.s32.totalorder %s1721_s18, %s1721_s18 }
  0x18   :  { %v1719_v25 = vld [vmem:[%s2073_s0 + $0x70] sm:$0xff]   ;;  %v1720_v26 = vld [vmem:[%s2073_s0 + $0x78] sm:$0xff]  }
  0x19   :  { %p1728_p3 = por %p1727_p2, %p1726_p1 }
  0x1a   :  { %1411 = vmatmul.mubr.msk.bf16.gmra.mxu0 %vm126_vm0, %v1706_v13  ;;  %1419 = vmatmul.mubr.msk.bf16.gmra.mxu1 %vm126_vm0, %v1706_v13 }
  0x1b   :  { %213 = vmatprep.mubr.bf16.mxu0 %v1743_v2  ;;  %326 = vmatprep.mubr.bf16.mxu1 %v1743_v2  ;;  %p1729_p4 = pnand %p1728_p3, %p1722_p0 }
  0x22   :  { %1412 = vmatmul.mubr.msk.bf16.gmra.mxu0 %vm126_vm0, %v1707_v14  ;;  %1420 = vmatmul.mubr.msk.bf16.gmra.mxu1 %vm126_vm0, %v1707_v14 }
  0x23   :  { %223 = vmatprep.mubr.bf16.mxu0 %v1743_v2  ;;  %336 = vmatprep.mubr.bf16.mxu1 %v1743_v2 }
  0x2a   :  { %1413 = vmatmul.mubr.msk.bf16.gmra.mxu0 %vm126_vm0, %v1708_v15  ;;  %1421 = vmatmul.mubr.msk.bf16.gmra.mxu1 %vm126_vm0, %v1708_v15 }
  0x2b   :  { %233 = vmatprep.mubr.bf16.mxu0 %v1743_v2  ;;  %346 = vmatprep.mubr.bf16.mxu1 %v1743_v2 }
  0x32   :  { %1414 = vmatmul.mubr.msk.bf16.gmra.mxu0 %vm126_vm0, %v1710_v16  ;;  %1422 = vmatmul.mubr.msk.bf16.gmra.mxu1 %vm126_vm0, %v1710_v16 }
  0x33   :  { %243 = vmatprep.mubr.bf16.mxu0 %v1743_v2  ;;  %356 = vmatprep.mubr.bf16.mxu1 %v1743_v2 }
  0x3a   :  { %1415 = vmatmul.mubr.msk.bf16.gmra.mxu0 %vm126_vm0, %v1711_v17  ;;  %1423 = vmatmul.mubr.msk.bf16.gmra.mxu1 %vm126_vm0, %v1711_v17 }
  0x3b   :  { %253 = vmatprep.mubr.bf16.mxu0 %v1743_v2  ;;  %366 = vmatprep.mubr.bf16.mxu1 %v1743_v2 }
  0x42   :  { %1416 = vmatmul.mubr.msk.bf16.gmra.mxu0 %vm126_vm0, %v1712_v18  ;;  %1424 = vmatmul.mubr.msk.bf16.gmra.mxu1 %vm126_vm0, %v1712_v18 }
  0x43   :  { %1651 = vmatprep.mubr.msk.bf16.mxu0 %vm126_vm0, %v1703_v9  ;;  %840 = vmatprep.mubr.bf16.mxu1 %v1743_v2 }
  0x4a   :  { %1652 = vmatmul.mubr.msk.bf16.vlgmr.msra.gmra.mxu0 %vm126_vm0, %v1705_v12  ;;  %1491 = vmatmul.mubr.msk.bf16.vlgmr.msra.gmra.mxu1 %vm126_vm0, %v1713_v19 }
  0x4b   :  { %934 = vmatpush1.bf16.msra.mxu0 %v1786_v4  ;;  %1668 = vmatpush3.bf16.msra.mxu1 %v1704_v10 }
  0x4c   :  { %1655 = vmatprep.mubr.msk.bf16.mxu0 %vm126_vm0, %v1706_v13  ;;  %850 = vmatprep.mubr.bf16.mxu1 %v1743_v2 }
  0x4d   :  { %935 = vmatprep.subr.bf16.mxu0 %v1795_v6  ;;  %1669 = vmatprep.subr.bf16.mxu1 %v1709_v11 }
  0x4f   :  { %936 = vmatpush1.bf16.msra.mxu0 %v1803_v8  ;;  %1670 = vmatpush3.bf16.msra.mxu1 %v1709_v11 }
  0x52   :  { %1656 = vmatmul.mubr.msk.bf16.gmra.mxu0 %vm126_vm0, %v1707_v14  ;;  %1492 = vmatmul.mubr.msk.bf16.gmra.mxu1 %vm126_vm0, %v1714_v20 }
  0x53   :  { %1659 = vmatprep.mubr.msk.bf16.mxu0 %vm126_vm0, %v1708_v15  ;;  %860 = vmatprep.mubr.bf16.mxu1 %v1743_v2 }
  0x5a   :  { %1660 = vmatmul.mubr.msk.bf16.gmra.mxu0 %vm126_vm0, %v1710_v16  ;;  %1493 = vmatmul.mubr.msk.bf16.gmra.mxu1 %vm126_vm0, %v1715_v21 }
  0x5b   :  { %1663 = vmatprep.mubr.msk.bf16.mxu0 %vm126_vm0, %v1711_v17  ;;  %870 = vmatprep.mubr.bf16.mxu1 %v1743_v2 }
  0x62   :  { %1664 = vmatmul.mubr.msk.bf16.gmra.mxu0 %vm126_vm0, %v1712_v18  ;;  %1494 = vmatmul.mubr.msk.bf16.gmra.mxu1 %vm126_vm0, %v1716_v22 }
  0x63   :  { %880 = vmatprep.mubr.bf16.mxu1 %v1743_v2  ;;  %953 = vmatprep.mubr.bf16.mxu0 %v1743_v2 }
  0x6a   :  { %1495 = vmatmul.mubr.msk.bf16.gmra.mxu1 %vm126_vm0, %v1717_v23  ;;  %1499 = vmatmul.mubr.msk.bf16.vlgmr.msra.gmra.mxu0 %vm126_vm0, %v1713_v19 }
  0x6b   :  { %890 = vmatprep.mubr.bf16.mxu1 %v1743_v2  ;;  %963 = vmatprep.mubr.bf16.mxu0 %v1743_v2 }
  0x72   :  { %1496 = vmatmul.mubr.msk.bf16.gmra.mxu1 %vm126_vm0, %v1718_v24  ;;  %1500 = vmatmul.mubr.msk.bf16.gmra.mxu0 %vm126_vm0, %v1714_v20 }
  0x73   :  { %900 = vmatprep.mubr.bf16.mxu1 %v1743_v2  ;;  %973 = vmatprep.mubr.bf16.mxu0 %v1743_v2 }
  0x7a   :  { %1497 = vmatmul.mubr.msk.bf16.gmra.mxu1 %vm126_vm0, %v1719_v25  ;;  %1501 = vmatmul.mubr.msk.bf16.gmra.mxu0 %vm126_vm0, %v1715_v21 }
  0x7b   :  { %910 = vmatprep.mubr.bf16.mxu1 %v1743_v2  ;;  %983 = vmatprep.mubr.bf16.mxu0 %v1743_v2 }
  0x82   :  { %1498 = vmatmul.mubr.msk.bf16.gmra.mxu1 %vm126_vm0, %v1720_v26  ;;  %1502 = vmatmul.mubr.msk.bf16.gmra.mxu0 %vm126_vm0, %v1716_v22 }
  0x83   :  { %993 = vmatprep.mubr.bf16.mxu0 %v1743_v2  ;;  %1671 = vmatprep.mubr.msk.bf16.mxu1 %vm126_vm0, %v1713_v19 }
  0x8a   :  { %1503 = vmatmul.mubr.msk.bf16.gmra.mxu0 %vm126_vm0, %v1717_v23  ;;  %1672 = vmatmul.mubr.msk.bf16.vlgmr.msra.gmra.mxu1 %vm126_vm0, %v1714_v20 }
  0x8b   :  { %1003 = vmatprep.mubr.bf16.mxu0 %v1743_v2  ;;  %1675 = vmatprep.mubr.msk.bf16.mxu1 %vm126_vm0, %v1715_v21 }
  0x92   :  { %1504 = vmatmul.mubr.msk.bf16.gmra.mxu0 %vm126_vm0, %v1718_v24  ;;  %1676 = vmatmul.mubr.msk.bf16.gmra.mxu1 %vm126_vm0, %v1716_v22 }
  0x93   :  { %1013 = vmatprep.mubr.bf16.mxu0 %v1743_v2  ;;  %1679 = vmatprep.mubr.msk.bf16.mxu1 %vm126_vm0, %v1717_v23 }
  0x9a   :  { %1505 = vmatmul.mubr.msk.bf16.gmra.mxu0 %vm126_vm0, %v1719_v25  ;;  %1680 = vmatmul.mubr.msk.bf16.gmra.mxu1 %vm126_vm0, %v1718_v24 }
  0x9b   :  { %1023 = vmatprep.mubr.bf16.mxu0 %v1743_v2  ;;  %1683 = vmatprep.mubr.msk.bf16.mxu1 %vm126_vm0, %v1719_v25 }
  0xa2   :  { %1506 = vmatmul.mubr.msk.bf16.gmra.mxu0 %vm126_vm0, %v1720_v26  ;;  %1684 = vmatmul.mubr.msk.bf16.gmra.mxu1 %vm126_vm0, %v1720_v26 }
  0xca   :  { %v185_v27 = vpop.f32.mrf.mxu0  ;;  %v298_v28 = vpop.f32.mrf.mxu1 }
  0xcc   :  { %v187_v29 = vpop.f32.mrf.mxu0  ;;  %v300_v30 = vpop.f32.mrf.mxu1 }
  0xcd   :  { %v1563_v31 = vpack.c.bf16 %v187_v29, %v185_v27  ;;  %v1564_v32 = vpack.c.bf16 %v300_v30, %v298_v28 }
  0xce   :  { %v189_v33 = vpop.f32.mrf.mxu0  ;;  %v302_v34 = vpop.f32.mrf.mxu1 }
  0xcf   :  { %569 = vst [vmem:[#allocation2] sm:$0xff] %v1563_v31  ;;  %570 = vst [vmem:[#allocation2 + $0x8] sm:$0xff] %v1564_v32 }
  0xd0   :  { %v191_v35 = vpop.f32.mrf.mxu0  ;;  %v304_v36 = vpop.f32.mrf.mxu1 }
  0xd1   :  { %v1565_v37 = vpack.c.bf16 %v191_v35, %v189_v33  ;;  %v1566_v38 = vpack.c.bf16 %v304_v36, %v302_v34 }
  0xd2   :  { %v195_v39 = vpop.f32.mrf.mxu0  ;;  %v308_v40 = vpop.f32.mrf.mxu1 }
  0xd3   :  { %571 = vst [vmem:[#allocation2 + $0x10] sm:$0xff] %v1565_v37  ;;  %572 = vst [vmem:[#allocation2 + $0x18] sm:$0xff] %v1566_v38 }
  0xd4   :  { %v197_v41 = vpop.f32.mrf.mxu0  ;;  %v310_v42 = vpop.f32.mrf.mxu1 }
  0xd5   :  { %v1567_v43 = vpack.c.bf16 %v197_v41, %v195_v39  ;;  %v1568_v44 = vpack.c.bf16 %v310_v42, %v308_v40 }
  0xd6   :  { %v199_v45 = vpop.f32.mrf.mxu0  ;;  %v312_v46 = vpop.f32.mrf.mxu1 }
  0xd7   :  { %573 = vst [vmem:[#allocation2 + $0x20] sm:$0xff] %v1567_v43  ;;  %574 = vst [vmem:[#allocation2 + $0x28] sm:$0xff] %v1568_v44 }
  0xd8   :  { %v201_v47 = vpop.f32.mrf.mxu0  ;;  %v314_v48 = vpop.f32.mrf.mxu1 }
  0xd9   :  { %v1569_v49 = vpack.c.bf16 %v201_v47, %v199_v45  ;;  %v1570_v50 = vpack.c.bf16 %v314_v48, %v312_v46 }
  0xda   :  { %v205_v51 = vpop.f32.mrf.mxu0  ;;  %v318_v52 = vpop.f32.mrf.mxu1 }
  0xdb   :  { %575 = vst [vmem:[#allocation2 + $0x30] sm:$0xff] %v1569_v49  ;;  %576 = vst [vmem:[#allocation2 + $0x38] sm:$0xff] %v1570_v50 }
  0xdc   :  { %v207_v53 = vpop.f32.mrf.mxu0  ;;  %v320_v54 = vpop.f32.mrf.mxu1 }
  0xdd   :  { %v1571_v55 = vpack.c.bf16 %v207_v53, %v205_v51  ;;  %v1572_v56 = vpack.c.bf16 %v320_v54, %v318_v52 }
  0xde   :  { %v209_v57 = vpop.f32.mrf.mxu0  ;;  %v322_v58 = vpop.f32.mrf.mxu1 }
  0xdf   :  { %577 = vst [vmem:[#allocation2 + $0x40] sm:$0xff] %v1571_v55  ;;  %578 = vst [vmem:[#allocation2 + $0x48] sm:$0xff] %v1572_v56 }
  0xe0   :  { %v211_v59 = vpop.f32.mrf.mxu0  ;;  %v324_v60 = vpop.f32.mrf.mxu1 }
  0xe1   :  { %v1573_v61 = vpack.c.bf16 %v211_v59, %v209_v57  ;;  %v1574_v62 = vpack.c.bf16 %v324_v60, %v322_v58 }
  0xe2   :  { %v215_v63 = vpop.f32.mrf.mxu0  ;;  %v328_v0 = vpop.f32.mrf.mxu1 }
  0xe3   :  { %579 = vst [vmem:[#allocation2 + $0x50] sm:$0xff] %v1573_v61  ;;  %580 = vst [vmem:[#allocation2 + $0x58] sm:$0xff] %v1574_v62 }
  0xe4   :  { %v217_v1 = vpop.f32.mrf.mxu0  ;;  %v330_v2 = vpop.f32.mrf.mxu1 }
  0xe5   :  { %v1575_v3 = vpack.c.bf16 %v217_v1, %v215_v63  ;;  %v1576_v4 = vpack.c.bf16 %v330_v2, %v328_v0 }
  0xe6   :  { %v219_v5 = vpop.f32.mrf.mxu0  ;;  %v332_v6 = vpop.f32.mrf.mxu1 }
  0xe7   :  { %581 = vst [vmem:[#allocation2 + $0x60] sm:$0xff] %v1575_v3  ;;  %582 = vst [vmem:[#allocation2 + $0x68] sm:$0xff] %v1576_v4 }
  0xe8   :  { %v221_v7 = vpop.f32.mrf.mxu0  ;;  %v334_v8 = vpop.f32.mrf.mxu1 }
  0xe9   :  { %v1577_v9 = vpack.c.bf16 %v221_v7, %v219_v5  ;;  %v1578_v10 = vpack.c.bf16 %v334_v8, %v332_v6 }
  0xea   :  { %v225_v11 = vpop.f32.mrf.mxu0  ;;  %v338_v12 = vpop.f32.mrf.mxu1 }
  0xeb   :  { %583 = vst [vmem:[#allocation2 + $0x70] sm:$0xff] %v1577_v9  ;;  %584 = vst [vmem:[#allocation2 + $0x78] sm:$0xff] %v1578_v10 }
  0xec   :  { %v227_v13 = vpop.f32.mrf.mxu0  ;;  %v340_v14 = vpop.f32.mrf.mxu1 }
  0xed   :  { %v1579_v15 = vpack.c.bf16 %v227_v13, %v225_v11  ;;  %v1580_v16 = vpack.c.bf16 %v340_v14, %v338_v12 }
  0xee   :  { %v229_v17 = vpop.f32.mrf.mxu0  ;;  %v342_v18 = vpop.f32.mrf.mxu1 }
  0xef   :  { %585 = vst [vmem:[#allocation2 + $0x80] sm:$0xff] %v1579_v15  ;;  %586 = vst [vmem:[#allocation2 + $0x88] sm:$0xff] %v1580_v16 }
  0xf0   :  { %v231_v19 = vpop.f32.mrf.mxu0  ;;  %v344_v20 = vpop.f32.mrf.mxu1 }
  0xf1   :  { %v1581_v21 = vpack.c.bf16 %v231_v19, %v229_v17  ;;  %v1582_v22 = vpack.c.bf16 %v344_v20, %v342_v18 }
  0xf2   :  { %v235_v23 = vpop.f32.mrf.mxu0  ;;  %v348_v24 = vpop.f32.mrf.mxu1 }
  0xf3   :  { %587 = vst [vmem:[#allocation2 + $0x90] sm:$0xff] %v1581_v21  ;;  %588 = vst [vmem:[#allocation2 + $0x98] sm:$0xff] %v1582_v22 }
  0xf4   :  { %v237_v25 = vpop.f32.mrf.mxu0  ;;  %v350_v26 = vpop.f32.mrf.mxu1 }
  0xf5   :  { %v1583_v27 = vpack.c.bf16 %v237_v25, %v235_v23  ;;  %v1584_v28 = vpack.c.bf16 %v350_v26, %v348_v24 }
  0xf6   :  { %v239_v29 = vpop.f32.mrf.mxu0  ;;  %v352_v30 = vpop.f32.mrf.mxu1 }
  0xf7   :  { %589 = vst [vmem:[#allocation2 + $0xa0] sm:$0xff] %v1583_v27  ;;  %590 = vst [vmem:[#allocation2 + $0xa8] sm:$0xff] %v1584_v28 }
  0xf8   :  { %v241_v31 = vpop.f32.mrf.mxu0  ;;  %v354_v32 = vpop.f32.mrf.mxu1 }
  0xf9   :  { %v1585_v33 = vpack.c.bf16 %v241_v31, %v239_v29  ;;  %v1586_v34 = vpack.c.bf16 %v354_v32, %v352_v30 }
  0xfa   :  { %v245_v35 = vpop.f32.mrf.mxu0  ;;  %v358_v36 = vpop.f32.mrf.mxu1 }
  0xfb   :  { %591 = vst [vmem:[#allocation2 + $0xb0] sm:$0xff] %v1585_v33  ;;  %592 = vst [vmem:[#allocation2 + $0xb8] sm:$0xff] %v1586_v34 }
  0xfc   :  { %v247_v37 = vpop.f32.mrf.mxu0  ;;  %v360_v38 = vpop.f32.mrf.mxu1 }
  0xfd   :  { %v1587_v39 = vpack.c.bf16 %v247_v37, %v245_v35  ;;  %v1588_v40 = vpack.c.bf16 %v360_v38, %v358_v36 }
  0xfe   :  { %v249_v41 = vpop.f32.mrf.mxu0  ;;  %v362_v42 = vpop.f32.mrf.mxu1 }
  0xff   :  { %593 = vst [vmem:[#allocation2 + $0xc0] sm:$0xff] %v1587_v39  ;;  %594 = vst [vmem:[#allocation2 + $0xc8] sm:$0xff] %v1588_v40 }
 0x100   :  { %v251_v43 = vpop.f32.mrf.mxu0  ;;  %v364_v44 = vpop.f32.mrf.mxu1 }
 0x101   :  { %v1589_v45 = vpack.c.bf16 %v251_v43, %v249_v41  ;;  %v1590_v46 = vpack.c.bf16 %v364_v44, %v362_v42 }
 0x102   :  { %v255_v47 = vpop.f32.mrf.mxu0  ;;  %v368_v48 = vpop.f32.mrf.mxu1 }
 0x103   :  { %595 = vst [vmem:[#allocation2 + $0xd0] sm:$0xff] %v1589_v45  ;;  %596 = vst [vmem:[#allocation2 + $0xd8] sm:$0xff] %v1590_v46 }
 0x104   :  { %v257_v49 = vpop.f32.mrf.mxu0  ;;  %v370_v50 = vpop.f32.mrf.mxu1 }
 0x105   :  { %v1591_v51 = vpack.c.bf16 %v257_v49, %v255_v47  ;;  %v1592_v52 = vpack.c.bf16 %v370_v50, %v368_v48 }
 0x106   :  { %v259_v53 = vpop.f32.mrf.mxu0  ;;  %v372_v54 = vpop.f32.mrf.mxu1 }
 0x107   :  { %597 = vst [vmem:[#allocation2 + $0xe0] sm:$0xff] %v1591_v51  ;;  %598 = vst [vmem:[#allocation2 + $0xe8] sm:$0xff] %v1592_v52 }
 0x108   :  { %v261_v55 = vpop.f32.mrf.mxu0  ;;  %v374_v56 = vpop.f32.mrf.mxu1 }
 0x109   :  { %v1593_v57 = vpack.c.bf16 %v261_v55, %v259_v53  ;;  %v1594_v58 = vpack.c.bf16 %v374_v56, %v372_v54 }
 0x10a   :  { %v1653_v59 = vpop.f32.mrf.mxu0  ;;  %v842_v60 = vpop.f32.mrf.mxu1 }
 0x10b   :  { %599 = vst [vmem:[#allocation2 + $0xf0] sm:$0xff] %v1593_v57  ;;  %600 = vst [vmem:[#allocation2 + $0xf8] sm:$0xff] %v1594_v58 }
 0x10c   :  { %713 = vst.msk [vmem:[%s2077_s4 + $0x10] sm:$0xff] %vm710_vm1, %v1653_v59  ;;  %v647_v61 = vpop.f32.mrf.mxu0  ;;  %v844_v62 = vpop.f32.mrf.mxu1 }
 0x10d   :  { %711 = vst.msk [vmem:[%s2077_s4] sm:$0xff] %vm710_vm1, %v647_v61  ;;  %v1595_v63 = vpack.c.bf16 %v844_v62, %v842_v60 }
 0x10e   :  { %v1654_v0 = vpop.f32.mrf.mxu0  ;;  %v846_v1 = vpop.f32.mrf.mxu1 }
 0x10f   :  { %1227 = vst [vmem:[#allocation2 + $0x100] sm:$0xff] %v1595_v63  ;;  %714 = vst.msk [vmem:[%s2077_s4 + $0x18] sm:$0xff] %vm710_vm1, %v1654_v0 }
 0x110   :  { %v650_v2 = vpop.f32.mrf.mxu0  ;;  %v848_v3 = vpop.f32.mrf.mxu1 }
 0x111   :  { %712 = vst.msk [vmem:[%s2077_s4 + $0x8] sm:$0xff] %vm710_vm1, %v650_v2  ;;  %v1597_v4 = vpack.c.bf16 %v848_v3, %v846_v1 }
 0x112   :  { %v1657_v5 = vpop.f32.mrf.mxu0  ;;  %v852_v6 = vpop.f32.mrf.mxu1 }
 0x113   :  { %1229 = vst [vmem:[#allocation2 + $0x110] sm:$0xff] %v1597_v4  ;;  %717 = vst.msk [vmem:[%s2077_s4 + $0x30] sm:$0xff] %vm710_vm1, %v1657_v5 }
 0x114   :  { %v663_v7 = vpop.f32.mrf.mxu0  ;;  %v854_v8 = vpop.f32.mrf.mxu1 }
 0x115   :  { %715 = vst.msk [vmem:[%s2077_s4 + $0x20] sm:$0xff] %vm710_vm1, %v663_v7  ;;  %v1599_v9 = vpack.c.bf16 %v854_v8, %v852_v6 }
 0x116   :  { %v1658_v10 = vpop.f32.mrf.mxu0  ;;  %v856_v11 = vpop.f32.mrf.mxu1 }
 0x117   :  { %1231 = vst [vmem:[#allocation2 + $0x120] sm:$0xff] %v1599_v9  ;;  %718 = vst.msk [vmem:[%s2077_s4 + $0x38] sm:$0xff] %vm710_vm1, %v1658_v10 }
 0x118   :  { %v666_v12 = vpop.f32.mrf.mxu0  ;;  %v858_v13 = vpop.f32.mrf.mxu1 }
 0x119   :  { %716 = vst.msk [vmem:[%s2077_s4 + $0x28] sm:$0xff] %vm710_vm1, %v666_v12  ;;  %v1601_v14 = vpack.c.bf16 %v858_v13, %v856_v11 }
 0x11a   :  { %v1661_v15 = vpop.f32.mrf.mxu0  ;;  %v862_v16 = vpop.f32.mrf.mxu1 }
 0x11b   :  { %1233 = vst [vmem:[#allocation2 + $0x130] sm:$0xff] %v1601_v14  ;;  %721 = vst.msk [vmem:[%s2077_s4 + $0x50] sm:$0xff] %vm710_vm1, %v1661_v15 }
 0x11c   :  { %v679_v17 = vpop.f32.mrf.mxu0  ;;  %v864_v18 = vpop.f32.mrf.mxu1 }
 0x11d   :  { %719 = vst.msk [vmem:[%s2077_s4 + $0x40] sm:$0xff] %vm710_vm1, %v679_v17  ;;  %v1603_v19 = vpack.c.bf16 %v864_v18, %v862_v16 }
 0x11e   :  { %v1662_v20 = vpop.f32.mrf.mxu0  ;;  %v866_v21 = vpop.f32.mrf.mxu1 }
 0x11f   :  { %1235 = vst [vmem:[#allocation2 + $0x140] sm:$0xff] %v1603_v19  ;;  %722 = vst.msk [vmem:[%s2077_s4 + $0x58] sm:$0xff] %vm710_vm1, %v1662_v20 }
 0x120   :  { %v682_v22 = vpop.f32.mrf.mxu0  ;;  %v868_v23 = vpop.f32.mrf.mxu1 }
 0x121   :  { %720 = vst.msk [vmem:[%s2077_s4 + $0x48] sm:$0xff] %vm710_vm1, %v682_v22  ;;  %v1605_v24 = vpack.c.bf16 %v868_v23, %v866_v21 }
 0x122   :  { %v1665_v25 = vpop.f32.mrf.mxu0  ;;  %v872_v26 = vpop.f32.mrf.mxu1 }
 0x123   :  { %1237 = vst [vmem:[#allocation2 + $0x150] sm:$0xff] %v1605_v24  ;;  %725 = vst.msk [vmem:[%s2077_s4 + $0x70] sm:$0xff] %vm710_vm1, %v1665_v25 }
 0x124   :  { %v695_v27 = vpop.f32.mrf.mxu0  ;;  %v874_v28 = vpop.f32.mrf.mxu1 }
 0x125   :  { %723 = vst.msk [vmem:[%s2077_s4 + $0x60] sm:$0xff] %vm710_vm1, %v695_v27  ;;  %v1607_v29 = vpack.c.bf16 %v874_v28, %v872_v26 }
 0x126   :  { %v1666_v30 = vpop.f32.mrf.mxu0  ;;  %v876_v31 = vpop.f32.mrf.mxu1 }
 0x127   :  { %1239 = vst [vmem:[#allocation2 + $0x160] sm:$0xff] %v1607_v29  ;;  %726 = vst.msk [vmem:[%s2077_s4 + $0x78] sm:$0xff] %vm710_vm1, %v1666_v30 }
 0x128   :  { %v698_v32 = vpop.f32.mrf.mxu0  ;;  %v878_v33 = vpop.f32.mrf.mxu1 }
 0x129   :  { %724 = vst.msk [vmem:[%s2077_s4 + $0x68] sm:$0xff] %vm710_vm1, %v698_v32  ;;  %v1609_v34 = vpack.c.bf16 %v878_v33, %v876_v31 }
 0x12a   :  { %v882_v35 = vpop.f32.mrf.mxu1  ;;  %v955_v36 = vpop.f32.mrf.mxu0 }
 0x12b   :  { %1241 = vst [vmem:[#allocation2 + $0x170] sm:$0xff] %v1609_v34 }
 0x12c   :  { %v884_v37 = vpop.f32.mrf.mxu1  ;;  %v957_v38 = vpop.f32.mrf.mxu0 }
 0x12d   :  { %v1611_v39 = vpack.c.bf16 %v884_v37, %v882_v35  ;;  %v1596_v40 = vpack.c.bf16 %v957_v38, %v955_v36 }
 0x12e   :  { %v886_v41 = vpop.f32.mrf.mxu1  ;;  %v959_v42 = vpop.f32.mrf.mxu0 }
 0x12f   :  { %1243 = vst [vmem:[#allocation2 + $0x180] sm:$0xff] %v1611_v39  ;;  %1228 = vst [vmem:[#allocation2 + $0x108] sm:$0xff] %v1596_v40 }
 0x130   :  { %v888_v43 = vpop.f32.mrf.mxu1  ;;  %v961_v44 = vpop.f32.mrf.mxu0 }
 0x131   :  { %v1613_v45 = vpack.c.bf16 %v888_v43, %v886_v41  ;;  %v1598_v46 = vpack.c.bf16 %v961_v44, %v959_v42 }
 0x132   :  { %v892_v47 = vpop.f32.mrf.mxu1  ;;  %v965_v48 = vpop.f32.mrf.mxu0 }
 0x133   :  { %1245 = vst [vmem:[#allocation2 + $0x190] sm:$0xff] %v1613_v45  ;;  %1230 = vst [vmem:[#allocation2 + $0x118] sm:$0xff] %v1598_v46 }
 0x134   :  { %v894_v49 = vpop.f32.mrf.mxu1  ;;  %v967_v50 = vpop.f32.mrf.mxu0 }
 0x135   :  { %v1615_v51 = vpack.c.bf16 %v894_v49, %v892_v47  ;;  %v1600_v52 = vpack.c.bf16 %v967_v50, %v965_v48 }
 0x136   :  { %v896_v53 = vpop.f32.mrf.mxu1  ;;  %v969_v54 = vpop.f32.mrf.mxu0 }
 0x137   :  { %1247 = vst [vmem:[#allocation2 + $0x1a0] sm:$0xff] %v1615_v51  ;;  %1232 = vst [vmem:[#allocation2 + $0x128] sm:$0xff] %v1600_v52 }
 0x138   :  { %v898_v55 = vpop.f32.mrf.mxu1  ;;  %v971_v56 = vpop.f32.mrf.mxu0 }
 0x139   :  { %v1617_v57 = vpack.c.bf16 %v898_v55, %v896_v53  ;;  %v1602_v58 = vpack.c.bf16 %v971_v56, %v969_v54 }
 0x13a   :  { %v902_v59 = vpop.f32.mrf.mxu1  ;;  %v975_v60 = vpop.f32.mrf.mxu0 }
 0x13b   :  { %1249 = vst [vmem:[#allocation2 + $0x1b0] sm:$0xff] %v1617_v57  ;;  %1234 = vst [vmem:[#allocation2 + $0x138] sm:$0xff] %v1602_v58 }
 0x13c   :  { %v904_v61 = vpop.f32.mrf.mxu1  ;;  %v977_v62 = vpop.f32.mrf.mxu0 }
 0x13d   :  { %v1619_v63 = vpack.c.bf16 %v904_v61, %v902_v59  ;;  %v1604_v0 = vpack.c.bf16 %v977_v62, %v975_v60 }
 0x13e   :  { %v906_v1 = vpop.f32.mrf.mxu1  ;;  %v979_v2 = vpop.f32.mrf.mxu0 }
 0x13f   :  { %1251 = vst [vmem:[#allocation2 + $0x1c0] sm:$0xff] %v1619_v63  ;;  %1236 = vst [vmem:[#allocation2 + $0x148] sm:$0xff] %v1604_v0 }
 0x140   :  { %v908_v3 = vpop.f32.mrf.mxu1  ;;  %v981_v4 = vpop.f32.mrf.mxu0 }
 0x141   :  { %v1621_v5 = vpack.c.bf16 %v908_v3, %v906_v1  ;;  %v1606_v6 = vpack.c.bf16 %v981_v4, %v979_v2 }
 0x142   :  { %v912_v7 = vpop.f32.mrf.mxu1  ;;  %v985_v8 = vpop.f32.mrf.mxu0 }
 0x143   :  { %1253 = vst [vmem:[#allocation2 + $0x1d0] sm:$0xff] %v1621_v5  ;;  %1238 = vst [vmem:[#allocation2 + $0x158] sm:$0xff] %v1606_v6 }
 0x144   :  { %v914_v9 = vpop.f32.mrf.mxu1  ;;  %v987_v10 = vpop.f32.mrf.mxu0 }
 0x145   :  { %v1623_v11 = vpack.c.bf16 %v914_v9, %v912_v7  ;;  %v1608_v12 = vpack.c.bf16 %v987_v10, %v985_v8 }
 0x146   :  { %v916_v13 = vpop.f32.mrf.mxu1  ;;  %v989_v14 = vpop.f32.mrf.mxu0 }
 0x147   :  { %1255 = vst [vmem:[#allocation2 + $0x1e0] sm:$0xff] %v1623_v11  ;;  %1240 = vst [vmem:[#allocation2 + $0x168] sm:$0xff] %v1608_v12 }
 0x148   :  { %v918_v15 = vpop.f32.mrf.mxu1  ;;  %v991_v16 = vpop.f32.mrf.mxu0 }
 0x149   :  { %v1625_v17 = vpack.c.bf16 %v918_v15, %v916_v13  ;;  %v1610_v18 = vpack.c.bf16 %v991_v16, %v989_v14 }
 0x14a   :  { %v995_v19 = vpop.f32.mrf.mxu0  ;;  %v1673_v20 = vpop.f32.mrf.mxu1 }
 0x14b   :  { %1257 = vst [vmem:[#allocation2 + $0x1f0] sm:$0xff] %v1625_v17  ;;  %1242 = vst [vmem:[#allocation2 + $0x178] sm:$0xff] %v1610_v18 }
 0x14c   :  { %1549 = vst.msk [vmem:[%s2077_s4 + $0x90] sm:$0xff] %vm710_vm1, %v1673_v20  ;;  %v997_v21 = vpop.f32.mrf.mxu0  ;;  %v1293_v22 = vpop.f32.mrf.mxu1 }
 0x14d   :  { %v1612_v23 = vpack.c.bf16 %v997_v21, %v995_v19  ;;  %1547 = vst.msk [vmem:[%s2077_s4 + $0x80] sm:$0xff] %vm710_vm1, %v1293_v22 }
 0x14e   :  { %v999_v24 = vpop.f32.mrf.mxu0  ;;  %v1674_v25 = vpop.f32.mrf.mxu1 }
 0x14f   :  { %1244 = vst [vmem:[#allocation2 + $0x188] sm:$0xff] %v1612_v23  ;;  %1550 = vst.msk [vmem:[%s2077_s4 + $0x98] sm:$0xff] %vm710_vm1, %v1674_v25 }
 0x150   :  { %v1001_v26 = vpop.f32.mrf.mxu0  ;;  %v1296_v27 = vpop.f32.mrf.mxu1 }
 0x151   :  { %v1614_v28 = vpack.c.bf16 %v1001_v26, %v999_v24  ;;  %1548 = vst.msk [vmem:[%s2077_s4 + $0x88] sm:$0xff] %vm710_vm1, %v1296_v27 }
 0x152   :  { %v1005_v29 = vpop.f32.mrf.mxu0  ;;  %v1677_v30 = vpop.f32.mrf.mxu1 }
 0x153   :  { %1246 = vst [vmem:[#allocation2 + $0x198] sm:$0xff] %v1614_v28  ;;  %1553 = vst.msk [vmem:[%s2077_s4 + $0xb0] sm:$0xff] %vm710_vm1, %v1677_v30 }
 0x154   :  { %v1007_v31 = vpop.f32.mrf.mxu0  ;;  %v1309_v32 = vpop.f32.mrf.mxu1 }
 0x155   :  { %v1616_v33 = vpack.c.bf16 %v1007_v31, %v1005_v29  ;;  %1551 = vst.msk [vmem:[%s2077_s4 + $0xa0] sm:$0xff] %vm710_vm1, %v1309_v32 }
 0x156   :  { %v1009_v34 = vpop.f32.mrf.mxu0  ;;  %v1678_v35 = vpop.f32.mrf.mxu1 }
 0x157   :  { %1248 = vst [vmem:[#allocation2 + $0x1a8] sm:$0xff] %v1616_v33  ;;  %1554 = vst.msk [vmem:[%s2077_s4 + $0xb8] sm:$0xff] %vm710_vm1, %v1678_v35 }
 0x158   :  { %v1011_v36 = vpop.f32.mrf.mxu0  ;;  %v1312_v37 = vpop.f32.mrf.mxu1 }
 0x159   :  { %v1618_v38 = vpack.c.bf16 %v1011_v36, %v1009_v34  ;;  %1552 = vst.msk [vmem:[%s2077_s4 + $0xa8] sm:$0xff] %vm710_vm1, %v1312_v37 }
 0x15a   :  { %v1015_v39 = vpop.f32.mrf.mxu0  ;;  %v1681_v40 = vpop.f32.mrf.mxu1 }
 0x15b   :  { %1250 = vst [vmem:[#allocation2 + $0x1b8] sm:$0xff] %v1618_v38  ;;  %1557 = vst.msk [vmem:[%s2077_s4 + $0xd0] sm:$0xff] %vm710_vm1, %v1681_v40 }
 0x15c   :  { %v1017_v41 = vpop.f32.mrf.mxu0  ;;  %v1325_v42 = vpop.f32.mrf.mxu1 }
 0x15d   :  { %v1620_v43 = vpack.c.bf16 %v1017_v41, %v1015_v39  ;;  %1555 = vst.msk [vmem:[%s2077_s4 + $0xc0] sm:$0xff] %vm710_vm1, %v1325_v42 }
 0x15e   :  { %v1019_v44 = vpop.f32.mrf.mxu0  ;;  %v1682_v45 = vpop.f32.mrf.mxu1 }
 0x15f   :  { %1252 = vst [vmem:[#allocation2 + $0x1c8] sm:$0xff] %v1620_v43  ;;  %1558 = vst.msk [vmem:[%s2077_s4 + $0xd8] sm:$0xff] %vm710_vm1, %v1682_v45 }
 0x160   :  { %v1021_v46 = vpop.f32.mrf.mxu0  ;;  %v1328_v47 = vpop.f32.mrf.mxu1 }
 0x161   :  { %v1622_v48 = vpack.c.bf16 %v1021_v46, %v1019_v44  ;;  %1556 = vst.msk [vmem:[%s2077_s4 + $0xc8] sm:$0xff] %vm710_vm1, %v1328_v47 }
 0x162   :  { %v1025_v49 = vpop.f32.mrf.mxu0  ;;  %v1685_v50 = vpop.f32.mrf.mxu1 }
 0x163   :  { %1254 = vst [vmem:[#allocation2 + $0x1d8] sm:$0xff] %v1622_v48  ;;  %1561 = vst.msk [vmem:[%s2077_s4 + $0xf0] sm:$0xff] %vm710_vm1, %v1685_v50 }
 0x164   :  { %v1027_v51 = vpop.f32.mrf.mxu0  ;;  %v1341_v52 = vpop.f32.mrf.mxu1 }
 0x165   :  { %v1624_v53 = vpack.c.bf16 %v1027_v51, %v1025_v49  ;;  %1559 = vst.msk [vmem:[%s2077_s4 + $0xe0] sm:$0xff] %vm710_vm1, %v1341_v52 }
 0x166   :  { %v1029_v54 = vpop.f32.mrf.mxu0  ;;  %v1686_v55 = vpop.f32.mrf.mxu1 }
 0x167   :  { %1256 = vst [vmem:[#allocation2 + $0x1e8] sm:$0xff] %v1624_v53  ;;  %1562 = vst.msk [vmem:[%s2077_s4 + $0xf8] sm:$0xff] %vm710_vm1, %v1686_v55 }
 0x168   :  { %v1031_v56 = vpop.f32.mrf.mxu0  ;;  %v1344_v57 = vpop.f32.mrf.mxu1 }
 0x169   :  { %v1626_v58 = vpack.c.bf16 %v1031_v56, %v1029_v54  ;;  %1560 = vst.msk [vmem:[%s2077_s4 + $0xe8] sm:$0xff] %vm710_vm1, %v1344_v57 }
 0x16b   :  { %1258 = vst [vmem:[#allocation2 + $0x1f8] sm:$0xff] %v1626_v58 }
 0x16c   :  { %1732 = shalt.err (!%p1729_p4)
}
 0x16d   :  { %s1745_s19 = smov 256   ;;  %s1746_s20 = smov 16  }
 0x16e   :  { %1384 = dma.vmem_to_hbm [thread:$0]  %s1379_s13, 8192, %s2076_s3, [#allocation3], %s1745_s19, %s1745_s19, %s1746_s20  }
 0x16f   :  { %1741 = dma.done.wait [#allocation3], 8192  }
 0x170   :  { %1742 = vsyncadd [#allocation3], 4294959104 }
 0x171   :  { %1392 = vsyncpa [#allocation3], 1 }

</bundles_post_ra>
